<compile_context>
chip_gen: v7x
topology: tpu7x:2x2x1
jax: 0.10.0
libtpu: 0.0.40
codegen_flags: <defaults>
</compile_context>

<pallas_src>
import jax
import jax.numpy as jnp
from jax.experimental import pallas as pl
from jax.experimental.pallas import tpu as pltpu

LANE = 128          # TPU lane width; all feature dims padded to this
N_LAYERS = 4
DIMS = [(2, 50), (50, 100), (100, 50), (50, 2)]   # logical (in, out) per layer


def odefunc_kernel(y_ref, w_ref, b_ref, out_ref):
    # y_ref   : (TB, 128)      zero-padded state tile
    # w_ref   : (4, 128, 128)  zero-padded weights, (in, out) layout, resident
    # b_ref   : (4, 1, 128)    zero-padded biases, resident
    # out_ref : (TB, 128)      lane-dense output tile (cols 2..127 are zero)
    h = y_ref[...]
    h = jnp.tanh(jnp.dot(h, w_ref[0], preferred_element_type=jnp.float32)
                 + b_ref[0])
    h = jnp.tanh(jnp.dot(h, w_ref[1], preferred_element_type=jnp.float32)
                 + b_ref[1])
    h = jnp.tanh(jnp.dot(h, w_ref[2], preferred_element_type=jnp.float32)
                 + b_ref[2])
    out = jnp.dot(h, w_ref[3], preferred_element_type=jnp.float32) + b_ref[3]
    out_ref[...] = out.astype(out_ref.dtype)


def pack_params(params):
    """Pack per-layer (w, b) into two zero-padded slabs.

    Zero padding is exact: padded input lanes hit zero weight rows, padded
    output lanes get zero weight cols + zero bias, and tanh(0) = 0, so the
    extra lanes stay identically zero through the whole network.
    """
    w_slab = jnp.zeros((N_LAYERS, LANE, LANE), jnp.float32)
    b_slab = jnp.zeros((N_LAYERS, 1, LANE), jnp.float32)
    for i, (w, b) in enumerate(params):
        fan_in, fan_out = w.shape
        w_slab = w_slab.at[i, :fan_in, :fan_out].set(w)
        b_slab = b_slab.at[i, 0, :fan_out].set(b.reshape(-1))
    return w_slab, b_slab


def odefunc_forward(t, y, packed, *, block_batch=512):
    """Pallas-backed equivalent of ODEFunc.forward(t, y). `t` is unused."""
    del t
    w_slab, b_slab = packed
    batch, feat = y.shape

    # Lane-pad the state once in the wrapper (cheap, keeps the kernel dense).
    y_pad = jnp.zeros((batch, LANE), jnp.float32).at[:, :feat].set(y)

    # Batch tile: multiple of 8 (or the full batch) so the (8,128) rule holds.
    tb = batch if batch <= block_batch else block_batch
    grid = (pl.cdiv(batch, tb),)

    n_params = sum(fi * fo + fo for fi, fo in DIMS)
    cost = pl.CostEstimate(
        flops=2 * batch * sum(fi * fo for fi, fo in DIMS),
        transcendentals=batch * sum(fo for _, fo in DIMS[:-1]),
        bytes_accessed=4 * (batch * (DIMS[0][0] + DIMS[-1][1]) + n_params),
    )

    out_pad = pl.pallas_call(
        odefunc_kernel,
        out_shape=jax.ShapeDtypeStruct((batch, LANE), jnp.float32),
        grid_spec=pltpu.PrefetchScalarGridSpec(
            num_scalar_prefetch=0,
            grid=grid,
            in_specs=[
                pl.BlockSpec((tb, LANE), lambda i: (i, 0)),              # y tile
                pl.BlockSpec((N_LAYERS, LANE, LANE), lambda i: (0, 0, 0)),  # W resident
                pl.BlockSpec((N_LAYERS, 1, LANE), lambda i: (0, 0, 0)),     # b resident
            ],
            out_specs=pl.BlockSpec((tb, LANE), lambda i: (i, 0)),
        ),
        compiler_params=pltpu.CompilerParams(
            dimension_semantics=("parallel",),
        ),
        cost_estimate=cost,
    )(y_pad, w_slab, b_slab)

    return out_pad[:, :DIMS[-1][1]]


def init_params(key):
    """Deterministic init matching PyTorch Linear default U[-1/sqrt(in), 1/sqrt(in)].

    Weights stored as (in, out); biases as (1, out).
    """
    params = []
    for (fan_in, fan_out) in DIMS:
        key, kw, kb = jax.random.split(key, 3)
        bound = 1.0 / (fan_in ** 0.5)
        w = jax.random.uniform(kw, (fan_in, fan_out), jnp.float32,
                               minval=-bound, maxval=bound)
        b = jax.random.uniform(kb, (1, fan_out), jnp.float32,
                               minval=-bound, maxval=bound)
        params.append((w, b))
    return params


def odefunc_reference(t, y, params):
    del t
    h = y
    for i, (w, b) in enumerate(params):
        h = h @ w + b
        if i < len(params) - 1:
            h = jnp.tanh(h)
    return h


if __name__ == "__main__":
    key = jax.random.PRNGKey(0)
    key, ky = jax.random.split(key)

    params = init_params(key)
    packed = pack_params(params)

    batch = 8
    y = jax.random.normal(ky, (batch, 2), jnp.float32)   # state: [position, velocity]
    t = jnp.float32(0.0)                                  # unused, as in the module

    out = odefunc_forward(t, y, packed)
    out = jax.block_until_ready(out)

    ref = odefunc_reference(t, y, params)
    assert out.shape == (batch, 2), out.shape
    assert jnp.allclose(out, ref, atol=1e-5, rtol=1e-5), "mismatch vs reference"

    print("KERNEL_OK")
</pallas_src>

<mosaic_0001>
module attributes {stable_mosaic.version = 11 : i64} {
  func.func @odefunc_kernel(%arg0: i32, %arg1: memref<8x128xf32, #tpu.memory_space<vmem>>, %arg2: memref<4x128x128xf32, #tpu.memory_space<vmem>>, %arg3: memref<4x1x128xf32, #tpu.memory_space<vmem>>, %arg4: memref<8x128xf32, #tpu.memory_space<vmem>>) attributes {dimension_semantics = [#tpu.dimension_semantics<parallel>], iteration_bounds = array<i64: 1>, scalar_prefetch = 0 : i64, scratch_operands = 0 : i64, tpu.core_type = #tpu.core_type<tc>, window_params = [{transform_indices = @transform_0, window_bounds = array<i64: 8, 128>}, {pipeline_mode = #tpu.pipeline_mode<synchronous>, transform_indices = @transform_1, window_bounds = array<i64: 4, 128, 128>}, {pipeline_mode = #tpu.pipeline_mode<synchronous>, transform_indices = @transform_2, window_bounds = array<i64: 4, 1, 128>}, {transform_indices = @transform_3, window_bounds = array<i64: 8, 128>}]} {
    %c0 = arith.constant 0 : index
    %c0_0 = arith.constant 0 : index
    %0 = vector.load %arg1[%c0, %c0_0] : memref<8x128xf32, #tpu.memory_space<vmem>>, vector<8x128xf32>
    %c0_1 = arith.constant 0 : index
    %c0_2 = arith.constant 0 : index
    %c0_3 = arith.constant 0 : index
    %1 = vector.load %arg2[%c0_1, %c0_2, %c0_3] : memref<4x128x128xf32, #tpu.memory_space<vmem>>, vector<1x128x128xf32>
    %2 = vector.shape_cast %1 : vector<1x128x128xf32> to vector<128x128xf32>
    %cst = arith.constant dense<0.000000e+00> : vector<8x128xf32>
    %3 = tpu.matmul %0, %2, %cst {dimension_numbers = #tpu.dot_dimension_numbers<[1], [0], [0], [1], [0, 0, 1, 1], [], []>} : vector<8x128xf32>, vector<128x128xf32>, vector<8x128xf32> -> vector<8x128xf32>
    %c0_4 = arith.constant 0 : index
    %c0_5 = arith.constant 0 : index
    %c0_6 = arith.constant 0 : index
    %4 = vector.load %arg3[%c0_4, %c0_5, %c0_6] : memref<4x1x128xf32, #tpu.memory_space<vmem>>, vector<1x1x128xf32>
    %5 = vector.shape_cast %4 : vector<1x1x128xf32> to vector<1x128xf32>
    %6 = vector.broadcast %5 : vector<1x128xf32> to vector<8x128xf32>
    %7 = arith.addf %3, %6 : vector<8x128xf32>
    %8 = math.tanh %7 : vector<8x128xf32>
    %c1 = arith.constant 1 : index
    %c0_7 = arith.constant 0 : index
    %c0_8 = arith.constant 0 : index
    %9 = vector.load %arg2[%c1, %c0_7, %c0_8] : memref<4x128x128xf32, #tpu.memory_space<vmem>>, vector<1x128x128xf32>
    %10 = vector.shape_cast %9 : vector<1x128x128xf32> to vector<128x128xf32>
    %cst_9 = arith.constant dense<0.000000e+00> : vector<8x128xf32>
    %11 = tpu.matmul %8, %10, %cst_9 {dimension_numbers = #tpu.dot_dimension_numbers<[1], [0], [0], [1], [0, 0, 1, 1], [], []>} : vector<8x128xf32>, vector<128x128xf32>, vector<8x128xf32> -> vector<8x128xf32>
    %c1_10 = arith.constant 1 : index
    %c0_11 = arith.constant 0 : index
    %c0_12 = arith.constant 0 : index
    %12 = vector.load %arg3[%c1_10, %c0_11, %c0_12] : memref<4x1x128xf32, #tpu.memory_space<vmem>>, vector<1x1x128xf32>
    %13 = vector.shape_cast %12 : vector<1x1x128xf32> to vector<1x128xf32>
    %14 = vector.broadcast %13 : vector<1x128xf32> to vector<8x128xf32>
    %15 = arith.addf %11, %14 : vector<8x128xf32>
    %16 = math.tanh %15 : vector<8x128xf32>
    %c2 = arith.constant 2 : index
    %c0_13 = arith.constant 0 : index
    %c0_14 = arith.constant 0 : index
    %17 = vector.load %arg2[%c2, %c0_13, %c0_14] : memref<4x128x128xf32, #tpu.memory_space<vmem>>, vector<1x128x128xf32>
    %18 = vector.shape_cast %17 : vector<1x128x128xf32> to vector<128x128xf32>
    %cst_15 = arith.constant dense<0.000000e+00> : vector<8x128xf32>
    %19 = tpu.matmul %16, %18, %cst_15 {dimension_numbers = #tpu.dot_dimension_numbers<[1], [0], [0], [1], [0, 0, 1, 1], [], []>} : vector<8x128xf32>, vector<128x128xf32>, vector<8x128xf32> -> vector<8x128xf32>
    %c2_16 = arith.constant 2 : index
    %c0_17 = arith.constant 0 : index
    %c0_18 = arith.constant 0 : index
    %20 = vector.load %arg3[%c2_16, %c0_17, %c0_18] : memref<4x1x128xf32, #tpu.memory_space<vmem>>, vector<1x1x128xf32>
    %21 = vector.shape_cast %20 : vector<1x1x128xf32> to vector<1x128xf32>
    %22 = vector.broadcast %21 : vector<1x128xf32> to vector<8x128xf32>
    %23 = arith.addf %19, %22 : vector<8x128xf32>
    %24 = math.tanh %23 : vector<8x128xf32>
    %c3 = arith.constant 3 : index
    %c0_19 = arith.constant 0 : index
    %c0_20 = arith.constant 0 : index
    %25 = vector.load %arg2[%c3, %c0_19, %c0_20] : memref<4x128x128xf32, #tpu.memory_space<vmem>>, vector<1x128x128xf32>
    %26 = vector.shape_cast %25 : vector<1x128x128xf32> to vector<128x128xf32>
    %cst_21 = arith.constant dense<0.000000e+00> : vector<8x128xf32>
    %27 = tpu.matmul %24, %26, %cst_21 {dimension_numbers = #tpu.dot_dimension_numbers<[1], [0], [0], [1], [0, 0, 1, 1], [], []>} : vector<8x128xf32>, vector<128x128xf32>, vector<8x128xf32> -> vector<8x128xf32>
    %c3_22 = arith.constant 3 : index
    %c0_23 = arith.constant 0 : index
    %c0_24 = arith.constant 0 : index
    %28 = vector.load %arg3[%c3_22, %c0_23, %c0_24] : memref<4x1x128xf32, #tpu.memory_space<vmem>>, vector<1x1x128xf32>
    %29 = vector.shape_cast %28 : vector<1x1x128xf32> to vector<1x128xf32>
    %30 = vector.broadcast %29 : vector<1x128xf32> to vector<8x128xf32>
    %31 = arith.addf %27, %30 : vector<8x128xf32>
    %c0_25 = arith.constant 0 : index
    %c0_26 = arith.constant 0 : index
    %32 = vector.load %arg4[%c0_25, %c0_26] : memref<8x128xf32, #tpu.memory_space<vmem>>, vector<8x128xf32>
    tpu.vector_store %arg4[%c0_25, %c0_26], %31 {strides = array<i32>} : memref<8x128xf32, #tpu.memory_space<vmem>>, vector<8x128xf32>,
    return
  }
  func.func @transform_0(%arg0: i32) -> (i32, i32) {
    %c0_i32 = arith.constant 0 : i32
    %c0_i32_0 = arith.constant 0 : i32
    return %arg0, %c0_i32 : i32, i32
  }
  func.func @transform_1(%arg0: i32) -> (i32, i32, i32) {
    %c0_i32 = arith.constant 0 : i32
    %c0_i32_0 = arith.constant 0 : i32
    %c0_i32_1 = arith.constant 0 : i32
    %c0_i32_2 = arith.constant 0 : i32
    return %c0_i32, %c0_i32_0, %c0_i32_1 : i32, i32, i32
  }
  func.func @transform_2(%arg0: i32) -> (i32, i32, i32) {
    %c0_i32 = arith.constant 0 : i32
    %c0_i32_0 = arith.constant 0 : i32
    %c0_i32_1 = arith.constant 0 : i32
    %c0_i32_2 = arith.constant 0 : i32
    return %c0_i32, %c0_i32_0, %c0_i32_1 : i32, i32, i32
  }
  func.func @transform_3(%arg0: i32) -> (i32, i32) {
    %c0_i32 = arith.constant 0 : i32
    %c0_i32_0 = arith.constant 0 : i32
    return %arg0, %c0_i32 : i32, i32
  }
}

</mosaic_0001>

<bundles_post_ra>
// kernel: tpu_custom_call.1
= control target key start
LH: loop header
LB: loop body
LE: loop exit
PB: predicated region body
PF: predicated region fallthrough
CT: control target
= control target key end

     0   :  { %8 = vsyncpa [#allocation3], 0  ;;  %s960_s0 = inlined_call_operand.hbm [shape: f32[8,128], index: 0, kind: input, shape index: {}]   ;;  %s961_s1 = inlined_call_operand.hbm [shape: f32[4,128,128], index: 1, kind: input, shape index: {}]   ;;  %s962_s2 = inlined_call_operand.vmem [shape: f32[4,1,128], index: 2, kind: input, shape index: {}]   ;;  %s963_s3 = inlined_call_operand.hbm [shape: f32[8,128], index: 3, kind: output, shape index: {}]  }
   0x1   :  { %9 = vsyncpa [#allocation6], 0 }
   0x2   :  { %10 = vsyncpa [#allocation4], 0  ;;  %s837_s12 = smov [#allocation2]   ;;  %s838_s14 = smov [#allocation5]  }
   0x3   :  { %s17_s13 = sshll.u32 %s837_s12, 4  ;;  %s26_s15 = sshll.u32 %s838_s14, 4  ;;  %s18_s13 = int_to_ptr.vmem [resolvable:$true] %s17_s13  ;;  %s865_s15 = int_to_ptr.vmem [resolvable:$true] %s26_s15 }
   0x4   :  { %s765_s18 = scalar_lea.hbm %s960_s0, 128 }
   0x5   :  { %p766_p0 = scmp.ne.s32.totalorder %s960_s0, %s765_s18  ;;  %p769_p1 = scmp.lt.u32.totalorder %s765_s18, %s960_s0 }
   0x7   :  { %p771_p2 = pnand %p769_p1, %p766_p0 }
   0x9   :  { %774 = shalt.err (!%p771_p2)
}
   0xa   :  { %s775_s23 = scalar_lea.vmem %s18_s13, 128  ;;  %p780_p4 = scmp.lt.s32.totalorder %s18_s13, %s18_s13 }
   0xb   :  { %p776_p3 = scmp.ne.s32.totalorder %s18_s13, %s775_s23  ;;  %p781_p5 = scmp.lt.s32.totalorder %s775_s23, %s775_s23 }
   0xd   :  { %p782_p6 = por %p781_p5, %p780_p4 }
   0xf   :  { %p783_p7 = pnand %p782_p6, %p776_p3 }
  0x11   :  { %786 = shalt.err (!%p783_p7)
}
  0x12   :  { %20 = dma.hbm_to_vmem [thread:$0]  %s960_s0, 128, %s18_s13, [#allocation3]  }
  0x13   :  { %s787_s28 = scalar_lea.hbm %s961_s1, 8192 }
  0x14   :  { %p788_p8 = scmp.ne.s32.totalorder %s961_s1, %s787_s28  ;;  %p791_p9 = scmp.lt.u32.totalorder %s787_s28, %s961_s1 }
  0x16   :  { %p793_p10 = pnand %p791_p9, %p788_p8 }
  0x18   :  { %796 = shalt.err (!%p793_p10)
}
  0x19   :  { %s797_s6 = scalar_lea.vmem %s865_s15, 8192  ;;  %p802_p12 = scmp.lt.s32.totalorder %s865_s15, %s865_s15 }
  0x1a   :  { %p798_p11 = scmp.ne.s32.totalorder %s865_s15, %s797_s6  ;;  %p803_p13 = scmp.lt.s32.totalorder %s797_s6, %s797_s6 }
  0x1c   :  { %p804_p0 = por %p803_p13, %p802_p12 }
  0x1e   :  { %p805_p1 = pnand %p804_p0, %p798_p11 }
  0x20   :  { %808 = shalt.err (!%p805_p1)
}
  0x21   :  { %s839_s0 = smov 128   ;;  %s840_s7 = smov 8  }
  0x22   :  { %32 = dma.hbm_to_vmem [thread:$0]  %s961_s1, 8192, %s865_s15, [#allocation6], %s839_s0, %s839_s0, %s840_s7  }
  0x23   :  { %831 = dma.done.wait [#allocation3], 128  }
  0x24   :  { %832 = vsyncadd [#allocation3], 4294967168 }
  0x25   :  { %833 = dma.done.wait [#allocation6], 8192  }
  0x26   :  { %834 = vsyncadd [#allocation6], 4294959104  ;;  %v841_v0 = vmov 0.0|0.0   ;;  %vm842_vm0 = vmmov 0   ;;  %v843_v1 = vmov 0.0   ;;  %v42_v2 = vld [vmem:[#allocation5] sm:$0xff] }
  0x27   :  { %655 = vmatprep.subr.bf16.mxu0 %v841_v0  ;;  %547 = vmatprep.mubr.msk.f32.mxu0 %vm842_vm0, %v843_v1  ;;  %v43_v3 = vld [vmem:[#allocation5 + $0x8] sm:$0xff]  ;;  %v44_v4 = vld [vmem:[#allocation5 + $0x10] sm:$0xff]  ;;  %v45_v6 = vld [vmem:[#allocation5 + $0x18] sm:$0xff]  ;;  %s844_s17 = smov [#allocation7]  }
  0x28   :  { %679 = vmatprep.subr.bf16.mxu1 %v841_v0  ;;  %582 = vmatprep.mubr.msk.f32.mxu1 %vm842_vm0, %v843_v1  ;;  %v656_v5 = vpack.c.bf16 %v43_v3, %v42_v2  ;;  %v659_v7 = vpack.c.bf16 %v45_v6, %v44_v4  ;;  %v46_v8 = vld [vmem:[#allocation5 + $0x20] sm:$0xff]  ;;  %v47_v9 = vld [vmem:[#allocation5 + $0x28] sm:$0xff]  ;;  %v139_v12 = vld [vmem:[#allocation5 + $0x90] sm:$0xff]  ;;  %s430_s18 = sshll.u32 %s844_s17, 4  ;;  %s431_s18 = int_to_ptr.vmem [resolvable:$true] %s430_s18 }
  0x29   :  { %v137_v10 = vld [vmem:[#allocation5 + $0x80] sm:$0xff]  ;;  %v138_v11 = vld [vmem:[#allocation5 + $0x88] sm:$0xff]  ;;  %v140_v13 = vld [vmem:[#allocation5 + $0x98] sm:$0xff]  ;;  %v662_v14 = vpack.c.bf16 %v47_v9, %v46_v8  ;;  %s809_s19 = scalar_lea.vmem %s431_s18, 128  ;;  %p814_p3 = scmp.lt.s32.totalorder %s431_s18, %s431_s18 }
  0x2a   :  { %657 = vmatpush3.bf16.msra.mxu0 %v656_v5  ;;  %v680_v15 = vpack.c.bf16 %v138_v11, %v137_v10  ;;  %v48_v16 = vld [vmem:[#allocation5 + $0x30] sm:$0xff]  ;;  %v49_v17 = vld [vmem:[#allocation5 + $0x38] sm:$0xff]  ;;  %v683_v18 = vpack.c.bf16 %v140_v13, %v139_v12  ;;  %v141_v19 = vld [vmem:[#allocation5 + $0xa0] sm:$0xff]  ;;  %p810_p2 = scmp.ne.s32.totalorder %s431_s18, %s809_s19  ;;  %p815_p4 = scmp.lt.s32.totalorder %s809_s19, %s809_s19 }
  0x2b   :  { %658 = vmatprep.subr.bf16.mxu0 %v841_v0  ;;  %v142_v20 = vld [vmem:[#allocation5 + $0xa8] sm:$0xff]  ;;  %v665_v21 = vpack.c.bf16 %v49_v17, %v48_v16  ;;  %v50_v22 = vld [vmem:[#allocation5 + $0x40] sm:$0xff]  ;;  %v143_v25 = vld [vmem:[#allocation5 + $0xb0] sm:$0xff] }
  0x2c   :  { %681 = vmatpush3.bf16.msra.mxu1 %v680_v15  ;;  %v51_v23 = vld [vmem:[#allocation5 + $0x48] sm:$0xff]  ;;  %v686_v24 = vpack.c.bf16 %v142_v20, %v141_v19  ;;  %v144_v26 = vld [vmem:[#allocation5 + $0xb8] sm:$0xff]  ;;  %v52_v28 = vld [vmem:[#allocation5 + $0x50] sm:$0xff]  ;;  %p816_p5 = por %p815_p4, %p814_p3 }
  0x2d   :  { %682 = vmatprep.subr.bf16.mxu1 %v841_v0  ;;  %v668_v27 = vpack.c.bf16 %v51_v23, %v50_v22  ;;  %v53_v29 = vld [vmem:[#allocation5 + $0x58] sm:$0xff]  ;;  %v689_v30 = vpack.c.bf16 %v144_v26, %v143_v25  ;;  %v145_v31 = vld [vmem:[#allocation5 + $0xc0] sm:$0xff]  ;;  %v146_v32 = vld [vmem:[#allocation5 + $0xc8] sm:$0xff] }
  0x2e   :  { %660 = vmatpush3.bf16.msra.mxu0 %v659_v7  ;;  %v671_v33 = vpack.c.bf16 %v53_v29, %v52_v28  ;;  %v54_v34 = vld [vmem:[#allocation5 + $0x60] sm:$0xff]  ;;  %v55_v35 = vld [vmem:[#allocation5 + $0x68] sm:$0xff]  ;;  %v692_v36 = vpack.c.bf16 %v146_v32, %v145_v31  ;;  %v56_v38 = vld [vmem:[#allocation5 + $0x70] sm:$0xff]  ;;  %p817_p6 = pnand %p816_p5, %p810_p2 }
  0x2f   :  { %661 = vmatprep.subr.bf16.mxu0 %v841_v0  ;;  %v674_v37 = vpack.c.bf16 %v55_v35, %v54_v34  ;;  %v57_v39 = vld [vmem:[#allocation5 + $0x78] sm:$0xff]  ;;  %v147_v42 = vld [vmem:[#allocation5 + $0xd0] sm:$0xff]  ;;  %v149_v45 = vld [vmem:[#allocation5 + $0xe0] sm:$0xff] }
  0x30   :  { %684 = vmatpush3.bf16.msra.mxu1 %v683_v18  ;;  %v677_v40 = vpack.c.bf16 %v57_v39, %v56_v38  ;;  %v41_v41 = vld [vmem:[#allocation2] sm:$0xff]  ;;  %v150_v46 = vld [vmem:[#allocation5 + $0xe8] sm:$0xff]  ;;  %v151_v48 = vld [vmem:[#allocation5 + $0xf0] sm:$0xff] }
  0x31   :  { %685 = vmatprep.subr.bf16.mxu1 %v841_v0  ;;  %v148_v43 = vld [vmem:[#allocation5 + $0xd8] sm:$0xff]  ;;  %v698_v47 = vpack.c.bf16 %v150_v46, %v149_v45  ;;  %v233_v51 = vld [vmem:[#allocation5 + $0x100] sm:$0xff]  ;;  %v234_v52 = vld [vmem:[#allocation5 + $0x108] sm:$0xff] }
  0x32   :  { %663 = vmatpush3.bf16.msra.mxu0 %v662_v14  ;;  %v695_v44 = vpack.c.bf16 %v148_v43, %v147_v42  ;;  %v152_v49 = vld [vmem:[#allocation5 + $0xf8] sm:$0xff]  ;;  %v235_v53 = vld [vmem:[#allocation5 + $0x110] sm:$0xff]  ;;  %v704_v54 = vpack.c.bf16 %v234_v52, %v233_v51  ;;  %v237_v57 = vld [vmem:[#allocation5 + $0x120] sm:$0xff] }
  0x33   :  { %664 = vmatprep.subr.bf16.mxu0 %v841_v0  ;;  %v701_v50 = vpack.c.bf16 %v152_v49, %v151_v48  ;;  %v236_v55 = vld [vmem:[#allocation5 + $0x118] sm:$0xff]  ;;  %v238_v58 = vld [vmem:[#allocation5 + $0x128] sm:$0xff]  ;;  %v239_v60 = vld [vmem:[#allocation5 + $0x130] sm:$0xff] }
  0x34   :  { %687 = vmatpush3.bf16.msra.mxu1 %v686_v24  ;;  %v707_v56 = vpack.c.bf16 %v236_v55, %v235_v53  ;;  %v710_v59 = vpack.c.bf16 %v238_v58, %v237_v57  ;;  %v240_v61 = vld [vmem:[#allocation5 + $0x138] sm:$0xff]  ;;  %v241_v63 = vld [vmem:[#allocation5 + $0x140] sm:$0xff]  ;;  %v242_v2 = vld [vmem:[#allocation5 + $0x148] sm:$0xff] }
  0x35   :  { %688 = vmatprep.subr.bf16.mxu1 %v841_v0  ;;  %v713_v62 = vpack.c.bf16 %v240_v61, %v239_v60  ;;  %v716_v3 = vpack.c.bf16 %v242_v2, %v241_v63  ;;  %v440_v4 = vld [vmem:[%s962_s2] ss:$0 sm:$0xff]  ;;  %v243_v9 = vld [vmem:[#allocation5 + $0x150] sm:$0xff]  ;;  %v245_v12 = vld [vmem:[#allocation5 + $0x160] sm:$0xff] }
  0x36   :  { %666 = vmatpush3.bf16.msra.mxu0 %v665_v21  ;;  %v244_v10 = vld [vmem:[#allocation5 + $0x158] sm:$0xff]  ;;  %v246_v13 = vld [vmem:[#allocation5 + $0x168] sm:$0xff]  ;;  %v247_v15 = vld [vmem:[#allocation5 + $0x170] sm:$0xff] }
  0x37   :  { %667 = vmatprep.subr.bf16.mxu0 %v841_v0  ;;  %v719_v11 = vpack.c.bf16 %v244_v10, %v243_v9  ;;  %v722_v14 = vpack.c.bf16 %v246_v13, %v245_v12  ;;  %v248_v16 = vld [vmem:[#allocation5 + $0x178] sm:$0xff]  ;;  %v329_v18 = vld [vmem:[#allocation5 + $0x180] sm:$0xff]  ;;  %v330_v19 = vld [vmem:[#allocation5 + $0x188] sm:$0xff] }
  0x38   :  { %690 = vmatpush3.bf16.msra.mxu1 %v689_v30  ;;  %v725_v17 = vpack.c.bf16 %v248_v16, %v247_v15  ;;  %v331_v20 = vld [vmem:[#allocation5 + $0x190] sm:$0xff]  ;;  %v332_v21 = vld [vmem:[#allocation5 + $0x198] sm:$0xff]  ;;  %v333_v23 = vld [vmem:[#allocation5 + $0x1a0] sm:$0xff] }
  0x39   :  { %691 = vmatprep.subr.bf16.mxu1 %v841_v0  ;;  %v731_v22 = vpack.c.bf16 %v332_v21, %v331_v20  ;;  %v334_v24 = vld [vmem:[#allocation5 + $0x1a8] sm:$0xff]  ;;  %v335_v26 = vld [vmem:[#allocation5 + $0x1b0] sm:$0xff]  ;;  %v337_v29 = vld [vmem:[#allocation5 + $0x1c0] sm:$0xff] }
  0x3a   :  { %669 = vmatpush3.bf16.msra.mxu0 %v668_v27  ;;  %v734_v25 = vpack.c.bf16 %v334_v24, %v333_v23  ;;  %v336_v27 = vld [vmem:[#allocation5 + $0x1b8] sm:$0xff]  ;;  %v338_v30 = vld [vmem:[#allocation5 + $0x1c8] sm:$0xff]  ;;  %v343_v43 = vld [vmem:[#allocation5 + $0x1f0] sm:$0xff] }
  0x3b   :  { %670 = vmatprep.subr.bf16.mxu0 %v841_v0  ;;  %v737_v28 = vpack.c.bf16 %v336_v27, %v335_v26  ;;  %v740_v31 = vpack.c.bf16 %v338_v30, %v337_v29  ;;  %v442_v32 = vld [vmem:[%s962_s2 + $0x1] ss:$0 sm:$0xff]  ;;  %v444_v46 = vld [vmem:[%s962_s2 + $0x2] ss:$0 sm:$0xff]  ;;  %v446_v51 = vld [vmem:[%s962_s2 + $0x3] ss:$0 sm:$0xff] }
  0x3c   :  { %693 = vmatpush3.bf16.msra.mxu1 %v692_v36  ;;  %v340_v38 = vld [vmem:[#allocation5 + $0x1d8] sm:$0xff] }
  0x3d   :  { %694 = vmatprep.subr.bf16.mxu1 %v841_v0 }
  0x3e   :  { %672 = vmatpush3.bf16.msra.mxu0 %v671_v33 }
  0x3f   :  { %673 = vmatprep.subr.bf16.mxu0 %v841_v0 }
  0x40   :  { %696 = vmatpush3.bf16.msra.mxu1 %v695_v44  ;;  %v344_v44 = vld [vmem:[#allocation5 + $0x1f8] sm:$0xff] }
  0x41   :  { %697 = vmatprep.subr.bf16.mxu1 %v841_v0  ;;  %v749_v45 = vpack.c.bf16 %v344_v44, %v343_v43 }
  0x42   :  { %675 = vmatpush3.bf16.msra.mxu0 %v674_v37  ;;  %v339_v37 = vld [vmem:[#allocation5 + $0x1d0] sm:$0xff] }
  0x43   :  { %676 = vmatprep.subr.bf16.mxu0 %v841_v0  ;;  %v743_v39 = vpack.c.bf16 %v340_v38, %v339_v37 }
  0x44   :  { %699 = vmatpush3.bf16.msra.mxu1 %v698_v47 }
  0x45   :  { %700 = vmatprep.subr.bf16.mxu1 %v841_v0 }
  0x46   :  { %678 = vmatpush3.bf16.msra.mxu0 %v677_v40  ;;  %v341_v40 = vld [vmem:[#allocation5 + $0x1e0] sm:$0xff] }
  0x47   :  { %703 = vmatprep.subr.bf16.mxu0 %v841_v0 }
  0x48   :  { %702 = vmatpush3.bf16.msra.mxu1 %v701_v50 }
  0x49   :  { %548 = vmatmul.mubr.f32.vlgmr.msra.gmra.mrb[0].mxu0 %v41_v41  ;;  %727 = vmatprep.subr.bf16.mxu1 %v841_v0  ;;  %v342_v41 = vld [vmem:[#allocation5 + $0x1e8] sm:$0xff] }
  0x4a   :  { %617 = vmatprep.mubr.msk.f32.mxu0 %vm842_vm0, %v843_v1  ;;  %705 = vmatpush3.bf16.msra.mxu0 %v704_v54  ;;  %v746_v42 = vpack.c.bf16 %v342_v41, %v341_v40 }
  0x4b   :  { %706 = vmatprep.subr.bf16.mxu0 %v841_v0 }
  0x4e   :  { %708 = vmatpush3.bf16.msra.mxu0 %v707_v56 }
  0x4f   :  { %709 = vmatprep.subr.bf16.mxu0 %v841_v0 }
  0x52   :  { %711 = vmatpush3.bf16.msra.mxu0 %v710_v59 }
  0x53   :  { %712 = vmatprep.subr.bf16.mxu0 %v841_v0 }
  0x56   :  { %714 = vmatpush3.bf16.msra.mxu0 %v713_v62 }
  0x57   :  { %715 = vmatprep.subr.bf16.mxu0 %v841_v0 }
  0x5a   :  { %717 = vmatpush3.bf16.msra.mxu0 %v716_v3 }
  0x5b   :  { %718 = vmatprep.subr.bf16.mxu0 %v841_v0 }
  0x5e   :  { %720 = vmatpush3.bf16.msra.mxu0 %v719_v11 }
  0x5f   :  { %721 = vmatprep.subr.bf16.mxu0 %v841_v0 }
  0x62   :  { %723 = vmatpush3.bf16.msra.mxu0 %v722_v14 }
  0x63   :  { %724 = vmatprep.subr.bf16.mxu0 %v841_v0 }
  0x66   :  { %726 = vmatpush3.bf16.msra.mxu0 %v725_v17 }
 0x11c   :  { %v131_v5 = vpop.f32.mrb[0].mxu0 }
 0x11d   :  { %v132_v6 = vadd.f32 %v440_v4, %v131_v5  ;;  %v549_v7 = vpop.f32.mrb[1].mxu0 }
 0x11f   :  { %759 = vtanh.f32 %v132_v6 }
 0x129   :  { %v760_v8 = vpop.eup %759 }
 0x12a   :  { %583 = vmatmul.mubr.f32.vlgmr.msra.gmra.mrb[0].mxu1 %v760_v8 }
 0x12b   :  { %652 = vmatprep.mubr.msk.f32.mxu1 %vm842_vm0, %v843_v1  ;;  %v728_v1 = vpack.c.bf16 %v330_v19, %v329_v18 }
 0x12d   :  { %729 = vmatpush3.bf16.msra.mxu1 %v728_v1 }
 0x12e   :  { %730 = vmatprep.subr.bf16.mxu1 %v841_v0 }
 0x131   :  { %732 = vmatpush3.bf16.msra.mxu1 %v731_v22 }
 0x132   :  { %733 = vmatprep.subr.bf16.mxu1 %v841_v0 }
 0x135   :  { %735 = vmatpush3.bf16.msra.mxu1 %v734_v25 }
 0x136   :  { %736 = vmatprep.subr.bf16.mxu1 %v841_v0 }
 0x139   :  { %738 = vmatpush3.bf16.msra.mxu1 %v737_v28 }
 0x13a   :  { %739 = vmatprep.subr.bf16.mxu1 %v841_v0 }
 0x13d   :  { %741 = vmatpush3.bf16.msra.mxu1 %v740_v31 }
 0x13e   :  { %742 = vmatprep.subr.bf16.mxu1 %v841_v0 }
 0x141   :  { %744 = vmatpush3.bf16.msra.mxu1 %v743_v39 }
 0x142   :  { %745 = vmatprep.subr.bf16.mxu1 %v841_v0 }
 0x145   :  { %747 = vmatpush3.bf16.msra.mxu1 %v746_v42 }
 0x146   :  { %748 = vmatprep.subr.bf16.mxu1 %v841_v0 }
 0x149   :  { %750 = vmatpush3.bf16.msra.mxu1 %v749_v45 }
 0x1fd   :  { %v227_v33 = vpop.f32.mrb[0].mxu1 }
 0x1fe   :  { %v228_v34 = vadd.f32 %v442_v32, %v227_v33  ;;  %v584_v35 = vpop.f32.mrb[1].mxu1 }
 0x200   :  { %761 = vtanh.f32 %v228_v34 }
 0x20a   :  { %v762_v36 = vpop.eup %761 }
 0x20b   :  { %618 = vmatmul.mubr.f32.vlgmr.msra.gmra.mrb[2].mxu0 %v762_v36 }
 0x2de   :  { %v323_v47 = vpop.f32.mrb[2].mxu0 }
 0x2df   :  { %v324_v48 = vadd.f32 %v444_v46, %v323_v47  ;;  %v619_v49 = vpop.f32.mrb[3].mxu0 }
 0x2e1   :  { %763 = vtanh.f32 %v324_v48 }
 0x2eb   :  { %v764_v50 = vpop.eup %763 }
 0x2ec   :  { %653 = vmatmul.mubr.f32.vlgmr.msra.gmra.mrb[2].mxu1 %v764_v50 }
 0x3bf   :  { %v419_v52 = vpop.f32.mrb[2].mxu1 }
 0x3c0   :  { %v420_v53 = vadd.f32 %v446_v51, %v419_v52  ;;  %v654_v0 = vpop.f32.mrb[3].mxu1 }
 0x3c2   :  { %423 = vst [vmem:[#allocation7] sm:$0xff] %v420_v53 }
 0x3c3   :  { %820 = shalt.err (!%p817_p6)
}
 0x3c4   :  { %s821_s22 = scalar_lea.hbm %s963_s3, 128 }
 0x3c5   :  { %p822_p7 = scmp.ne.s32.totalorder %s963_s3, %s821_s22  ;;  %p825_p8 = scmp.lt.u32.totalorder %s821_s22, %s963_s3 }
 0x3c7   :  { %p827_p9 = pnand %p825_p8, %p822_p7 }
 0x3c9   :  { %830 = shalt.err (!%p827_p9)
}
 0x3ca   :  { %433 = dma.vmem_to_hbm [thread:$0]  %s431_s18, 128, %s963_s3, [#allocation4]  }
 0x3cb   :  { %835 = dma.done.wait [#allocation4], 128  }
 0x3cc   :  { %836 = vsyncadd [#allocation4], 4294967168 }
 0x3cd   :  { %437 = vsyncpa [#allocation3], 1 }
 0x3ce   :  { %438 = vsyncpa [#allocation6], 1 }
 0x3cf   :  { %439 = vsyncpa [#allocation4], 1 }

</bundles_post_ra>
